<compile_context>
chip_gen: v6e
topology: v6e:2x2x1
jax: 0.10.0
libtpu: 0.0.40
codegen_flags: <defaults>
</compile_context>

<pallas_src>
import jax
import jax.numpy as jnp
from jax.experimental import pallas as pl
from jax.experimental.pallas import tpu as pltpu


def _pooler_kernel(h_ref, dense_ref, outw_ref, bias_ref, o_ref):
    # All math in f32 (inputs may be bf16).
    h = h_ref[...].astype(jnp.float32)        # (Bt, Lt, D)
    d = dense_ref[...].astype(jnp.float32)    # (Lt, D)
    w = outw_ref[...].astype(jnp.float32)     # (Lt, D)
    b = bias_ref[...].astype(jnp.float32)     # (1, Lt)

    # out = tanh(hidden * label_dense)        (dropout p handled as identity)
    act = jnp.tanh(h * d[None, :, :])                      # VPU mul + EUP tanh
    # sum(out * label_outputs, dim=-1) + label_biases
    pooled = jnp.sum(act * w[None, :, :], axis=-1)         # XLU lane reduce -> (Bt, Lt)
    o_ref[...] = (pooled + b).astype(o_ref.dtype)          # (1, Lt) broadcasts over Bt


def _round_down(x, m):
    return (x // m) * m


def _round_up(x, m):
    return ((x + m - 1) // m) * m


def label_wise_pooler(hidden_states, label_dense, label_outputs, label_biases,
                      *, batch_tile=None, label_tile=None,
                      target_tile_bytes=4 << 20):
    """Pallas implementation of LabelWisePooler.forward (inference)."""
    B, L, D = hidden_states.shape
    assert label_dense.shape == (L, D)
    assert label_outputs.shape == (L, D)
    assert label_biases.shape == (L,)

    h_item = jnp.dtype(hidden_states.dtype).itemsize
    p_item = jnp.dtype(label_dense.dtype).itemsize

    # ---- label tiling (default: keep the whole label axis resident) --------
    if label_tile is None:
        label_tile = L
    assert L % label_tile == 0
    assert label_tile == L or label_tile % 128 == 0, \
        "label tile must be a multiple of 128 (or the full label dim)"
    # sublane packing of the (Lt, D) hidden tile for sub-32-bit dtypes
    sub = max(1, 4 // h_item)                 # 1 for f32, 2 for bf16
    assert label_tile == L or label_tile % (8 * sub) == 0

    # ---- batch tiling -------------------------------------------------------
    # Aim for a ~2-8 MiB hidden-state slab per grid step (HBM-read bound),
    # keep >= 2 batch grid steps when possible (v7x: 2 TensorCores), keep the
    # tile 8-aligned (output block's second-to-last dim), and don't over-pad
    # tiny batches.
    row_bytes = L * D * h_item
    if batch_tile is None:
        bt = max(8, _round_down(max(target_tile_bytes // row_bytes, 8), 8))
        if B >= 16:
            bt = min(bt, max(8, _round_down(B // 2, 8)))    # >= 2 grid steps
        bt = min(bt, _round_up(B, 8))
        batch_tile = bt
    assert batch_tile % 8 == 0, "batch tile must be 8-aligned"

    # ---- VMEM budget (generation-aware cap; v7x physical VMEM is 64 MiB) ----
    VMEM_CAP = 40 << 20

    def budget(bt):
        return (2 * bt * label_tile * D * h_item            # double-buffered hidden tile
                + 2 * 2 * label_tile * D * p_item           # double-buffered dense + outputs
                + 2 * label_tile * 4                        # bias
                + 2 * bt * label_tile * 4                   # output tile
                + 2 * bt * label_tile * D * 4               # f32 elementwise temps
                + (2 << 20))                                # slack

    while batch_tile > 8 and budget(batch_tile) > VMEM_CAP:
        batch_tile = max(8, _round_down(batch_tile // 2, 8))
    vmem_limit = int(min(max(budget(batch_tile), 16 << 20), VMEM_CAP))

    # ---- pad batch so any B works (padded rows are sliced off afterwards) ---
    B_pad = _round_up(B, batch_tile)
    if B_pad != B:
        hidden_states = jnp.pad(hidden_states, ((0, B_pad - B), (0, 0), (0, 0)))

    bias2d = label_biases.reshape(1, L)
    n_label = L // label_tile
    n_batch = B_pad // batch_tile

    # Label axis outermost: the (Lt, D) parameter blocks keep the same block
    # index across the whole inner batch sweep -> Pallas skips re-DMAing them.
    grid = (n_label, n_batch)

    grid_spec = pltpu.PrefetchScalarGridSpec(
        num_scalar_prefetch=0,
        grid=grid,
        in_specs=[
            pl.BlockSpec((batch_tile, label_tile, D), lambda lj, bi: (bi, lj, 0)),
            pl.BlockSpec((label_tile, D), lambda lj, bi: (lj, 0)),   # label_dense
            pl.BlockSpec((label_tile, D), lambda lj, bi: (lj, 0)),   # label_outputs
            pl.BlockSpec((1, label_tile), lambda lj, bi: (0, lj)),   # label_biases
        ],
        out_specs=pl.BlockSpec((batch_tile, label_tile), lambda lj, bi: (bi, lj)),
    )

    out = pl.pallas_call(
        _pooler_kernel,
        out_shape=jax.ShapeDtypeStruct((B_pad, L), jnp.float32),
        grid_spec=grid_spec,
        compiler_params=pltpu.CompilerParams(
            dimension_semantics=("parallel", "parallel"),
            vmem_limit_bytes=vmem_limit),
    )(hidden_states, label_dense, label_outputs, bias2d)

    if B_pad != B:
        out = out[:B]
    return out


# ---------------- pure-JAX reference (for correctness check) ----------------
def reference_forward(hidden_states, label_dense, label_outputs, label_biases):
    out = hidden_states.astype(jnp.float32) * label_dense[None, :, :]
    out = jnp.tanh(out)
    # dropout is identity at inference
    return jnp.sum(out * label_outputs[None, :, :], axis=-1) + label_biases[None, :]


if __name__ == "__main__":
    key = jax.random.PRNGKey(0)
    k1, k2, k3, k4, k5 = jax.random.split(key, 5)

    B, NUM_LABELS, D_MODEL = 16, 16, 128

    hidden_states = jax.random.normal(k1, (B, NUM_LABELS, D_MODEL), jnp.float32)
    label_dense   = 0.02 * jax.random.normal(k2, (NUM_LABELS, D_MODEL), jnp.float32)
    label_outputs = 0.02 * jax.random.normal(k3, (NUM_LABELS, D_MODEL), jnp.float32)
    label_biases  = 0.02 * jax.random.normal(k4, (NUM_LABELS,), jnp.float32)

    out = label_wise_pooler(hidden_states, label_dense, label_outputs, label_biases)
    out = jax.block_until_ready(out)
    ref = jax.block_until_ready(
        reference_forward(hidden_states, label_dense, label_outputs, label_biases))
    assert out.shape == (B, NUM_LABELS)
    assert jnp.allclose(out, ref, rtol=1e-4, atol=1e-4), "mismatch vs reference"

    # Non-multiple-of-8 batch: exercises the wrapper-side padding path.
    hs_odd = jax.random.normal(k5, (12, NUM_LABELS, D_MODEL), jnp.float32)
    out_odd = jax.block_until_ready(
        label_wise_pooler(hs_odd, label_dense, label_outputs, label_biases))
    ref_odd = reference_forward(hs_odd, label_dense, label_outputs, label_biases)
    assert out_odd.shape == (12, NUM_LABELS)
    assert jnp.allclose(out_odd, ref_odd, rtol=1e-4, atol=1e-4), "mismatch (padded batch)"

    print("KERNEL_OK")
</pallas_src>

<mosaic_0001>
module attributes {stable_mosaic.version = 11 : i64} {
  func.func @_pooler_kernel(%arg0: i32, %arg1: i32, %arg2: memref<8x16x128xf32, #tpu.memory_space<vmem>>, %arg3: memref<16x128xf32, #tpu.memory_space<vmem>>, %arg4: memref<16x128xf32, #tpu.memory_space<vmem>>, %arg5: memref<1x16xf32, #tpu.memory_space<vmem>>, %arg6: memref<8x16xf32, #tpu.memory_space<vmem>>) attributes {dimension_semantics = [#tpu.dimension_semantics<parallel>, #tpu.dimension_semantics<parallel>], iteration_bounds = array<i64: 1, 2>, scalar_prefetch = 0 : i64, scratch_operands = 0 : i64, tpu.core_type = #tpu.core_type<tc>, window_params = [{transform_indices = @transform_0, window_bounds = array<i64: 8, 16, 128>}, {transform_indices = @transform_1, window_bounds = array<i64: 16, 128>}, {transform_indices = @transform_2, window_bounds = array<i64: 16, 128>}, {transform_indices = @transform_3, window_bounds = array<i64: 1, 16>}, {transform_indices = @transform_4, window_bounds = array<i64: 8, 16>}]} {
    %c0 = arith.constant 0 : index
    %c0_0 = arith.constant 0 : index
    %c0_1 = arith.constant 0 : index
    %0 = vector.load %arg2[%c0, %c0_0, %c0_1] : memref<8x16x128xf32, #tpu.memory_space<vmem>>, vector<8x16x128xf32>
    %c0_2 = arith.constant 0 : index
    %c0_3 = arith.constant 0 : index
    %1 = vector.load %arg3[%c0_2, %c0_3] : memref<16x128xf32, #tpu.memory_space<vmem>>, vector<16x128xf32>
    %c0_4 = arith.constant 0 : index
    %c0_5 = arith.constant 0 : index
    %2 = vector.load %arg4[%c0_4, %c0_5] : memref<16x128xf32, #tpu.memory_space<vmem>>, vector<16x128xf32>
    %c0_6 = arith.constant 0 : index
    %c0_7 = arith.constant 0 : index
    %3 = vector.load %arg5[%c0_6, %c0_7] : memref<1x16xf32, #tpu.memory_space<vmem>>, vector<1x16xf32>
    %4 = vector.shape_cast %1 : vector<16x128xf32> to vector<1x16x128xf32>
    %5 = vector.broadcast %4 : vector<1x16x128xf32> to vector<8x16x128xf32>
    %6 = arith.mulf %0, %5 : vector<8x16x128xf32>
    %7 = math.tanh %6 : vector<8x16x128xf32>
    %8 = vector.shape_cast %2 : vector<16x128xf32> to vector<1x16x128xf32>
    %9 = vector.broadcast %8 : vector<1x16x128xf32> to vector<8x16x128xf32>
    %10 = arith.mulf %7, %9 : vector<8x16x128xf32>
    %cst = arith.constant dense<0.000000e+00> : vector<8x16xf32>
    %11 = vector.multi_reduction <add>, %10, %cst [2] : vector<8x16x128xf32> to vector<8x16xf32>
    %12 = vector.broadcast %3 : vector<1x16xf32> to vector<8x16xf32>
    %13 = arith.addf %11, %12 : vector<8x16xf32>
    %c0_8 = arith.constant 0 : index
    %c0_9 = arith.constant 0 : index
    %14 = vector.load %arg6[%c0_8, %c0_9] : memref<8x16xf32, #tpu.memory_space<vmem>>, vector<8x16xf32>
    tpu.vector_store %arg6[%c0_8, %c0_9], %13 {strides = array<i32>} : memref<8x16xf32, #tpu.memory_space<vmem>>, vector<8x16xf32>,
    return
  }
  func.func @transform_0(%arg0: i32, %arg1: i32) -> (i32, i32, i32) {
    %c0_i32 = arith.constant 0 : i32
    %c0_i32_0 = arith.constant 0 : i32
    return %arg1, %arg0, %c0_i32 : i32, i32, i32
  }
  func.func @transform_1(%arg0: i32, %arg1: i32) -> (i32, i32) {
    %c0_i32 = arith.constant 0 : i32
    %c0_i32_0 = arith.constant 0 : i32
    return %arg0, %c0_i32 : i32, i32
  }
  func.func @transform_2(%arg0: i32, %arg1: i32) -> (i32, i32) {
    %c0_i32 = arith.constant 0 : i32
    %c0_i32_0 = arith.constant 0 : i32
    return %arg0, %c0_i32 : i32, i32
  }
  func.func @transform_3(%arg0: i32, %arg1: i32) -> (i32, i32) {
    %c0_i32 = arith.constant 0 : i32
    %c0_i32_0 = arith.constant 0 : i32
    return %c0_i32, %arg0 : i32, i32
  }
  func.func @transform_4(%arg0: i32, %arg1: i32) -> (i32, i32) {
    %c0_i32 = arith.constant 0 : i32
    return %arg1, %arg0 : i32, i32
  }
}

</mosaic_0001>

<bundles_post_ra>
// kernel: tpu_custom_call.1
= control target key start
LH: loop header
LB: loop body
LE: loop exit
PB: predicated region body
PF: predicated region fallthrough
CT: control target
= control target key end

     0   :  { %9 = vsyncpa [#allocation3], 0  ;;  %s1299_s0 = inlined_call_operand.hbm [shape: f32[16,16,128], index: 0, kind: input, shape index: {}]   ;;  %s1300_s1 = inlined_call_operand.hbm [shape: f32[16,128], index: 1, kind: input, shape index: {}]   ;;  %s1301_s2 = inlined_call_operand.hbm [shape: f32[16,128], index: 2, kind: input, shape index: {}]   ;;  %s1302_s3 = inlined_call_operand.vmem [shape: f32[1,16], index: 3, kind: input, shape index: {}]   ;;  %s1303_s4 = inlined_call_operand.hbm [shape: f32[16,16], index: 4, kind: output, shape index: {}]  }
   0x1   :  { %11 = vsyncpa [#allocation3 + $0x1], 0 }
   0x2   :  { %12 = vsyncpa [#allocation6], 0 }
   0x3   :  { %13 = vsyncpa [#allocation4], 0 }
   0x4   :  { %15 = vsyncpa [#allocation4 + $0x1], 0  ;;  %s1059_s15 = smov 0   ;;  %s1061_s16 = smov 0  }
   0x5   :  { %s1063_s17 = smov 0   ;;  %s1065_s18 = smov 0  }
   0x6   :  { %s1067_s19 = smov 0   ;;  %s1069_s20 = smov 0  }
   0x7 LB: > { %s718_s21 = sadd.s32 4294967295, %s1025_s20   ;;  %s719_s22 = sadd.s32 4294967294, %s1025_s20   ;;  %s1025_s20 = sphi %s1069_s20, %s21_s20   ;;  %s1021_s19 = sphi %s1067_s19, %s1322_s19   ;;  %s1017_s18 = sphi %s1065_s18, %s1321_s18   ;;  %s1013_s17 = sphi %s1063_s17, %s1320_s17   ;;  %s1009_s16 = sphi %s1061_s16, %s1319_s16   ;;  %s1005_s15 = sphi %s1059_s15, %s1318_s15  }
   0x8   : > { %p55_p0 = scmp.ne.s32.totalorder %s1009_s16, %s1005_s15  ;;  %p1093_p1 = scmp.eq.s32.totalorder %s718_s21, 0 }
   0x9   : > { %p1097_p2 = scmp.eq.s32.totalorder %s718_s21, 1  ;;  %p165_p3 = scmp.eq.s32.totalorder %s719_s22, 1 }
   0xa   : > { %p1103_p4 = por %p1093_p1, %p55_p0  ;;  %p720_p5 = scmp.ge.s32.totalorder %s1025_s20, 1 }
   0xb   : > { %p1108_p6 = por %p165_p3, %p55_p0  ;;  %p172_p7 = scmp.lt.s32.totalorder %s1025_s20, 3 }
   0xc   : > { %s1027_s28 = smov [#allocation5]   ;;  %s1028_s5 = smov [#allocation7]  }
   0xd   : > { %s1309_s26 = scalar_select %p1108_p6, 1, 0 }
   0xe   : > { %p1113_p8 = pnand %p720_p5, %p172_p7  ;;  %s187_s29 = sshll.u32 %s1027_s28, 4  ;;  %s188_s29 = int_to_ptr.vmem [resolvable:$true] %s187_s29 }
   0xf   : > { %s203_s6 = sshll.u32 %s1028_s5, 4  ;;  %s872_s7 = scalar_lea.vmem %s188_s29, 256  ;;  %s204_s6 = int_to_ptr.vmem [resolvable:$true] %s203_s6 }
  0x10   : > { %p753_p9 = pneg %p1113_p8  ;;  %p873_p13 = scmp.ne.s32.totalorder %s188_s29, %s872_s7 }
  0x11   : > { %p880_p5 = scmp.lt.s32.totalorder %s188_s29, %s188_s29  ;;  %p881_p7 = scmp.lt.s32.totalorder %s872_s7, %s872_s7 }
  0x12   : > { %p1122_p11 = pnand %p753_p9, %p1093_p1 }
  0x13   : > { %p882_p10 = por %p881_p7, %p880_p5 }
  0x14   : > { %p863_p12 = pneg %p1122_p11 }
  0x16   : > { %p875_p0 = pnand %p873_p13, %p863_p12 }
  0x18   : > { %p876_p3 = pneg %p875_p0 }
  0x1a   : > { %p883_p9 = pnand %p882_p10, %p876_p3 }
  0x1c   : > { %886 = shalt.err (!%p883_p9)
}
  0x1d   : > { %s1304_s8 = smov 128   ;;  %s1305_s9 = smov 8  }
  0x1e   : > { %756 = dma.hbm_to_vmem [thread:$0]  (!%p1122_p11), %s1300_s1, 256, %s188_s29, [#allocation6], %s1304_s8, %s1304_s8, %s1305_s9  }
  0x1f   : > { %s898_s12 = scalar_lea.vmem %s204_s6, 256  ;;  %p906_p10 = scmp.lt.s32.totalorder %s204_s6, %s204_s6 }
  0x20   : > { %p899_p13 = scmp.ne.s32.totalorder %s204_s6, %s898_s12  ;;  %p907_p3 = scmp.lt.s32.totalorder %s898_s12, %s898_s12 }
  0x22   : > { %p901_p0 = pnand %p899_p13, %p863_p12  ;;  %p908_p7 = por %p907_p3, %p906_p10 }
  0x24   : > { %p902_p5 = pneg %p901_p0 }
  0x26   : > { %p909_p9 = pnand %p908_p7, %p902_p5 }
  0x28   : > { %912 = shalt.err (!%p909_p9)
}
  0x29   : > { %759 = dma.hbm_to_vmem [thread:$0]  (!%p1122_p11), %s1301_s2, 256, %s204_s6, [#allocation6], %s1304_s8, %s1304_s8, %s1305_s9  }
  0x2a   : > { %s30_s21 = sadd.s32 1, %s1021_s19  ;;  %s42_s22 = sadd.s32 1, %s1013_s17 }
  0x2b   : > { %p31_p12 = scmp.ge.s32.totalorder %s30_s21, 2  ;;  %p49_p13 = scmp.ne.s32.totalorder %s1013_s17, %s1009_s16 }
  0x2c   : > { %p50_p0 = scmp.eq.s32.totalorder %s1025_s20, 0  ;;  %p770_p5 = scmp.lt.s32.totalorder %s1025_s20, 2 }
  0x2d   : > { %s1324_s21 = smov (%p31_p12, %s30_s21), 0  ;;  %p1160_p3 = por %p1097_p2, %p49_p13 }
  0x2e   : > { %p51_p10 = por %p50_p0, %p49_p13  ;;  %s37_s29 = ssub.s32 %s1021_s19, %s1324_s21 }
  0x2f   : > { %s223_s30 = sand.u32 1, %s1013_s17   ;;  %p40_p7 = scmp.eq.s32.totalorder %s37_s29, 0 }
  0x30   : > { %s725_s5 = sshll.u32 %s223_s30, 7  ;;  %s740_s6 = sshll.u32 %s1021_s19, 11 }
  0x31   : > { %s1169_s7 = scalar_select %p40_p7, %s1013_s17, %s42_s22  }
  0x32   : > { %s236_s12 = scalar_lea.hbm %s1299_s0, %s740_s6  ;;  %s227_s13 = scalar_lea.vmem [#allocation2], %s725_s5 }
  0x33   : > { %s237_s14 = sshll.u32 %s227_s13, 4  ;;  %p1176_p11 = pnand %p770_p5, %p51_p10  ;;  %s238_s14 = int_to_ptr.vmem [resolvable:$true] %s237_s14 }
  0x34   : > { %s224_s8 = scalar_lea.sflag [#allocation3], %s223_s30  ;;  %s926_s29 = scalar_lea.vmem %s238_s14, 2048 }
  0x35   : > { %p915_p2 = pneg %p1176_p11  ;;  %p927_p9 = scmp.ne.s32.totalorder %s238_s14, %s926_s29 }
  0x36   : > { %s1031_s22 = smov [#allocation2]  }
  0x37   : > { %p929_p12 = pnand %p927_p9, %p915_p2  ;;  %s931_s9 = sshll.u32 %s1031_s22, 4  ;;  %s932_s9 = int_to_ptr.vmem [resolvable:$false] %s931_s9 }
  0x38   : > { %s933_s6 = scalar_lea.vmem %s932_s9, 4096  ;;  %p934_p0 = scmp.lt.s32.totalorder %s238_s14, %s932_s9 }
  0x39   : > { %p930_p13 = pneg %p929_p12  ;;  %p935_p7 = scmp.lt.s32.totalorder %s933_s6, %s926_s29 }
  0x3b   : > { %p936_p6 = por %p935_p7, %p934_p0 }
  0x3d   : > { %p937_p5 = pnand %p936_p6, %p930_p13 }
  0x3f   : > { %940 = shalt.err (!%p937_p5)
}
  0x40   : > { %s1314_s5 = smov 8   ;;  %s1315_s10 = smov 128  }
  0x41   : > { %763 = dma.hbm_to_vmem [thread:$0]  (!%p1176_p11), %s236_s12, 2048, %s238_s14, %s224_s8, %s1315_s10, %s1315_s10, %s1314_s5  }
  0x42   : > { %249 = sbr.rel (%p1113_p8) target bundleno = 439 (0x1b7), region = 36  ;;  %s1190_s30 = sand.u32 (!%p1113_p8), 1, %s1009_s16  }
  0x43   : > { %s730_s9 = sshll.u32 (!%p1113_p8), %s1190_s30, 7  ;;  %s252_s11 = scalar_lea.sflag (!%p1113_p8), [#allocation3], %s1190_s30 }
  0x44   : > { %s1194_s13 = scalar_lea.vmem (!%p1113_p8), [#allocation2], %s730_s9 }
  0x47   : > { %992 = dma.done.wait (%p1103_p4), %s252_s11, 2048  }
  0x48   : > { %994 = vsyncadd (%p1103_p4), %s252_s11, 4294965248 }
  0x49   : > { %996 = dma.done.wait (%p1093_p1), [#allocation6], 512  }
  0x4a   : > { %998 = vsyncadd (%p1093_p1), [#allocation6], 4294966784  ;;  %v300_v0 = vld [vmem:[%s1194_s13 + $0x10] sm:$0xff]  ;;  %v1205_v1 = vld [vmem:[#allocation5] sm:$0xff]  ;;  %vm504_vm0 = vcmask 130112   ;;  %vm569_vm1 = vcmask 1041409  }
  0x4b   : > { %v321_v2 = vmul.f32 %v1205_v1, %v300_v0  ;;  %v298_v3 = vld [vmem:[%s1194_s13] sm:$0xff]  ;;  %v301_v4 = vld [vmem:[%s1194_s13 + $0x18] sm:$0xff]  ;;  %v315_v5 = vld [vmem:[#allocation5 + $0x8] sm:$0xff]  ;;  %s733_s27 = sshll.u32 %s1190_s30, 3  ;;  %vm571_vm2 = vcmask 1042434   ;;  %vm573_vm3 = vcmask 1043459  }
  0x4c   : > { %v319_v6 = vmul.f32 %v1205_v1, %v298_v3  ;;  %v322_v7 = vmul.f32 %v315_v5, %v301_v4  ;;  %v299_v8 = vld [vmem:[%s1194_s13 + $0x8] sm:$0xff]  ;;  %v302_v12 = vld [vmem:[%s1194_s13 + $0x20] sm:$0xff]  ;;  %v305_v14 = vld [vmem:[%s1194_s13 + $0x38] sm:$0xff]  ;;  %vm575_vm4 = vcmask 1044484   ;;  %vm577_vm5 = vcmask 1045509   ;;  %s736_s8 = sshll.u32 %s1017_s18, 7 }
  0x4d   : > { %v303_v9 = vld [vmem:[%s1194_s13 + $0x28] sm:$0xff]  ;;  %829 = vtanh.f32 %v321_v2  ;;  %v320_v10 = vmul.f32 %v315_v5, %v299_v8  ;;  %v323_v13 = vmul.f32 %v1205_v1, %v302_v12  ;;  %v304_v15 = vld [vmem:[%s1194_s13 + $0x30] sm:$0xff]  ;;  %v326_v16 = vmul.f32 %v315_v5, %v305_v14  ;;  %v306_v19 = vld [vmem:[%s1194_s13 + $0x40] sm:$0xff]  ;;  %s290_s12 = scalar_lea.vmem [#allocation8], %s733_s27  ;;  %s1257_s22 = scalar_lea.hbm %s1303_s4, %s736_s8 }
  0x4e   : > { %v324_v11 = vmul.f32 %v315_v5, %v303_v9  ;;  %831 = vtanh.f32 %v319_v6  ;;  %v325_v17 = vmul.f32 %v1205_v1, %v304_v15  ;;  %v307_v18 = vld [vmem:[%s1194_s13 + $0x48] sm:$0xff]  ;;  %v327_v21 = vmul.f32 %v1205_v1, %v306_v19  ;;  %v309_v22 = vld [vmem:[%s1194_s13 + $0x58] sm:$0xff]  ;;  %v308_v23 = vld [vmem:[%s1194_s13 + $0x50] sm:$0xff]  ;;  %s601_s14 = sshll.u32 %s290_s12, 4  ;;  %s587_s18 = scalar_lea.sflag [#allocation4], %s1190_s30  ;;  %s602_s14 = int_to_ptr.vmem [resolvable:$true] %s601_s14 }
  0x4f   : > { %833 = vtanh.f32 %v322_v7  ;;  %v328_v20 = vmul.f32 %v315_v5, %v307_v18  ;;  %v1223_v24 = vld [vmem:[#allocation7] sm:$0xff]  ;;  %v330_v25 = vmul.f32 %v315_v5, %v309_v22  ;;  %v317_v27 = vld [vmem:[#allocation7 + $0x8] sm:$0xff]  ;;  %v329_v28 = vmul.f32 %v1205_v1, %v308_v23  ;;  %v311_v29 = vld [vmem:[%s1194_s13 + $0x68] sm:$0xff]  ;;  %s941_s6 = scalar_lea.vmem %s602_s14, 128  ;;  %s1033_s5 = smov [#allocation8]  }
  0x50   : > { %835 = vtanh.f32 %v320_v10  ;;  %v310_v32 = vld [vmem:[%s1194_s13 + $0x60] sm:$0xff]  ;;  %v332_v37 = vmul.f32 %v315_v5, %v311_v29  ;;  %v313_v41 = vld [vmem:[%s1194_s13 + $0x78] sm:$0xff]  ;;  %v312_v43 = vld [vmem:[%s1194_s13 + $0x70] sm:$0xff]  ;;  %vm579_vm6 = vcmask 1046534   ;;  %vm581_vm7 = vcmask 1047559   ;;  %p942_p1 = scmp.ne.s32.totalorder %s602_s14, %s941_s6  ;;  %s945_s10 = sshll.u32 %s1033_s5, 4  ;;  %s946_s10 = int_to_ptr.vmem [resolvable:$false] %s945_s10 }
  0x51   : > { %837 = vtanh.f32 %v324_v11  ;;  %v331_v40 = vmul.f32 %v1205_v1, %v310_v32  ;;  %v334_v45 = vmul.f32 %v315_v5, %v313_v41  ;;  %v333_v48 = vmul.f32 %v1205_v1, %v312_v43  ;;  %v734_v4 = vld [vmem:[%s1302_s3] ss:$0 sm:$0xff]  ;;  %s947_s9 = scalar_lea.vmem %s946_s10, 256  ;;  %p948_p8 = scmp.lt.s32.totalorder %s602_s14, %s946_s10 }
  0x52   : > { %839 = vtanh.f32 %v323_v13  ;;  %v1032_v5 = vmov 0   ;;  %vm584_vm8 = vcmask 130048   ;;  %p943_p4 = pnand %p942_p1, %p1160_p3  ;;  %p949_p10 = scmp.lt.s32.totalorder %s947_s9, %s941_s6 }
  0x53   : > { %841 = vtanh.f32 %v326_v16  ;;  %828 = vset.pattern.permute.xlu0 %v1032_v5  ;;  %827 = vset.pattern.permute.xlu1 %v1032_v5 }
  0x54   : > { %843 = vtanh.f32 %v325_v17  ;;  %p944_p6 = pneg %p943_p4  ;;  %p950_p11 = por %p949_p10, %p948_p8 }
  0x55   : > { %845 = vtanh.f32 %v328_v20 }
  0x56   : > { %847 = vtanh.f32 %v327_v21  ;;  %p951_p2 = pnand %p950_p11, %p944_p6 }
  0x57   : > { %849 = vtanh.f32 %v330_v25 }
  0x58   : > { %851 = vtanh.f32 %v329_v28 }
  0x59   : > { %853 = vtanh.f32 %v332_v37 }
  0x5a   : > { %v830_v26 = vpop.eup %829  ;;  %855 = vtanh.f32 %v331_v40 }
  0x5b   : > { %v832_v30 = vpop.eup %831  ;;  %v353_v31 = vmul.f32 %v830_v26, %v1223_v24  ;;  %857 = vtanh.f32 %v334_v45 }
  0x5c   : > { %v834_v33 = vpop.eup %833  ;;  %v351_v34 = vmul.f32 %v832_v30, %v1223_v24  ;;  %859 = vtanh.f32 %v333_v48 }
  0x5d   : > { %v836_v35 = vpop.eup %835  ;;  %371 = vadd.xlane.f32.xlu1 %v353_v31  ;;  %v354_v36 = vmul.f32 %v834_v33, %v317_v27 }
  0x5e   : > { %v838_v38 = vpop.eup %837  ;;  %367 = vadd.xlane.f32.xlu0 %v351_v34  ;;  %v352_v39 = vmul.f32 %v836_v35, %v317_v27 }
  0x5f   : > { %v840_v42 = vpop.eup %839  ;;  %v356_v44 = vmul.f32 %v838_v38, %v317_v27 }
  0x60   : > { %v842_v46 = vpop.eup %841  ;;  %v355_v47 = vmul.f32 %v840_v42, %v1223_v24 }
  0x61   : > { %373 = vadd.xlane.f32.xlu1 %v354_v36  ;;  %v844_v49 = vpop.eup %843  ;;  %v358_v50 = vmul.f32 %v842_v46, %v317_v27  ;;  %v493_v46 = vlaneseq }
  0x62   : > { %369 = vadd.xlane.f32.xlu0 %v352_v39  ;;  %v846_v51 = vpop.eup %845  ;;  %v357_v52 = vmul.f32 %v844_v49, %v1223_v24 }
  0x63   : > { %v848_v53 = vpop.eup %847  ;;  %v360_v54 = vmul.f32 %v846_v51, %v317_v27  ;;  %v494_v49 = vand.u32 127, %v493_v46  ;;  %v496_v51 = vshrl.u32 %v493_v46, 7 }
  0x64   : > { %v850_v55 = vpop.eup %849  ;;  %v359_v56 = vmul.f32 %v848_v53, %v1223_v24 }
  0x65   : > { %377 = vadd.xlane.f32.xlu1 %v356_v44  ;;  %v852_v57 = vpop.eup %851  ;;  %v362_v58 = vmul.f32 %v850_v55, %v317_v27  ;;  %v497_v55 = vsub.s32 %v494_v49, %v496_v51 }
  0x66   : > { %375 = vadd.xlane.f32.xlu0 %v355_v47  ;;  %v854_v59 = vpop.eup %853  ;;  %v361_v60 = vmul.f32 %v852_v57, %v1223_v24 }
  0x67   : > { %v856_v61 = vpop.eup %855  ;;  %v364_v62 = vmul.f32 %v854_v59, %v317_v27 }
  0x68   : > { %v858_v63 = vpop.eup %857  ;;  %v363_v0 = vmul.f32 %v856_v61, %v1223_v24 }
  0x69   : > { %381 = vadd.xlane.f32.xlu1 %v358_v50  ;;  %v860_v1 = vpop.eup %859  ;;  %v366_v2 = vmul.f32 %v858_v63, %v317_v27 }
  0x6a   : > { %379 = vadd.xlane.f32.xlu0 %v357_v52  ;;  %v365_v3 = vmul.f32 %v860_v1, %v1223_v24  ;;  %v499_v52 = vadd.s32 4294967288, %v494_v49 }
  0x6d   : > { %385 = vadd.xlane.f32.xlu1 %v360_v54 }
  0x6e   : > { %383 = vadd.xlane.f32.xlu0 %v359_v56  ;;  %v502_v56 = vsub.s32 %v499_v52, %v496_v51 }
  0x71   : > { %389 = vadd.xlane.f32.xlu1 %v362_v58 }
  0x72   : > { %387 = vadd.xlane.f32.xlu0 %v361_v60 }
  0x75   : > { %393 = vadd.xlane.f32.xlu1 %v364_v62 }
  0x76   : > { %391 = vadd.xlane.f32.xlu0 %v363_v0 }
  0x79   : > { %397 = vadd.xlane.f32.xlu1 %v366_v2 }
  0x7a   : > { %395 = vadd.xlane.f32.xlu0 %v365_v3 }
  0x8a   : > { %409 = vbcast.lane.b32.xlu1 %v734_v4, 264 }
  0x90   : > { %405 = vbcast.lane.b32.xlu0 %v734_v4, 256 }
  0xe6   : > { %v372_v6 = vpop.xlane.xlu1 %371 }
  0xe7   : > { %v368_v7 = vpop.xlane.xlu0 %367 }
  0xea   : > { %v374_v8 = vpop.xlane.xlu1 %373 }
  0xeb   : > { %v370_v9 = vpop.xlane.xlu0 %369 }
  0xee   : > { %v378_v10 = vpop.xlane.xlu1 %377 }
  0xef   : > { %v376_v11 = vpop.xlane.xlu0 %375 }
  0xf2   : > { %v382_v12 = vpop.xlane.xlu1 %381 }
  0xf3   : > { %v380_v13 = vpop.xlane.xlu0 %379 }
  0xf6   : > { %v386_v14 = vpop.xlane.xlu1 %385 }
  0xf7   : > { %v384_v15 = vpop.xlane.xlu0 %383 }
  0xfa   : > { %v390_v16 = vpop.xlane.xlu1 %389 }
  0xfb   : > { %v388_v17 = vpop.xlane.xlu0 %387 }
  0xfe   : > { %v394_v18 = vpop.xlane.xlu1 %393 }
  0xff   : > { %v392_v19 = vpop.xlane.xlu0 %391 }
 0x102   : > { %v398_v20 = vpop.xlane.xlu1 %397 }
 0x103   : > { %v396_v21 = vpop.xlane.xlu0 %395 }
 0x106   : > { %v410_v25 = vpop.permute.xlu1 %409 }
 0x107   : > { %v406_v22 = vpop.permute.xlu0 %405  ;;  %v418_v26 = vadd.f32 %v410_v25, %v378_v10  ;;  %v414_v27 = vadd.f32 %v410_v25, %v370_v9  ;;  %v420_v28 = vadd.f32 %v410_v25, %v382_v12  ;;  %v416_v29 = vadd.f32 %v410_v25, %v374_v8 }
 0x108   : > { %v415_v23 = vadd.f32 %v406_v22, %v372_v6  ;;  %v413_v24 = vadd.f32 %v406_v22, %v368_v7  ;;  %v422_v30 = vadd.f32 %v410_v25, %v386_v14  ;;  %v417_v31 = vadd.f32 %v406_v22, %v376_v11 }
 0x109   : > { %v424_v32 = vadd.f32 %v410_v25, %v390_v16  ;;  %v419_v33 = vadd.f32 %v406_v22, %v380_v13  ;;  %v426_v34 = vadd.f32 %v410_v25, %v394_v18  ;;  %v421_v35 = vadd.f32 %v406_v22, %v384_v15 }
 0x10a   : > { %452 = vperm.xlu0 %828, %v415_v23   ;;  %446 = vperm.xlu1 %827, %v413_v24   ;;  %v428_v36 = vadd.f32 %v410_v25, %v398_v20  ;;  %v423_v37 = vadd.f32 %v406_v22, %v388_v17  ;;  %v425_v38 = vadd.f32 %v406_v22, %v392_v19 }
 0x10b   : > { %v427_v39 = vadd.f32 %v406_v22, %v396_v21 }
 0x10e   : > { %461 = vperm.xlu0 %828, %v418_v26   ;;  %449 = vperm.xlu1 %827, %v414_v27  }
 0x112   : > { %467 = vperm.xlu0 %828, %v420_v28   ;;  %455 = vperm.xlu1 %827, %v416_v29  }
 0x116   : > { %473 = vperm.xlu0 %828, %v422_v30   ;;  %458 = vperm.xlu1 %827, %v417_v31  }
 0x11a   : > { %479 = vperm.xlu0 %828, %v424_v32   ;;  %464 = vperm.xlu1 %827, %v419_v33  }
 0x11e   : > { %485 = vperm.xlu0 %828, %v426_v34   ;;  %470 = vperm.xlu1 %827, %v421_v35  }
 0x122   : > { %491 = vperm.xlu0 %828, %v428_v36   ;;  %476 = vperm.xlu1 %827, %v423_v37  }
 0x126   : > { %482 = vperm.xlu1 %827, %v425_v38  }
 0x12a   : > { %488 = vperm.xlu1 %827, %v427_v39  }
 0x185   : > { %v453_v40 = vpop.permute.xlu0 %452  ;;  %v447_v41 = vpop.permute.xlu1 %446 }
 0x186   : > { %v509_v61 = vrot.slane %v453_v40, %v497_v55  ;;  %v498_v2 = vrot.slane %v447_v41, %v497_v55 }
 0x189   : > { %v462_v42 = vpop.permute.xlu0 %461  ;;  %v450_v43 = vpop.permute.xlu1 %449 }
 0x18a   : > { %v503_v62 = vrot.slane %v450_v43, %v502_v56  ;;  %v522_v0 = vrot.slane %v462_v42, %v502_v56 }
 0x18c   : > { %v505_v9 = vsel %vm504_vm0, %v503_v62, %v498_v2 }
 0x18d   : > { %v468_v44 = vpop.permute.xlu0 %467  ;;  %v456_v45 = vpop.permute.xlu1 %455 }
 0x18e   : > { %v513_v57 = vrot.slane %v456_v45, %v502_v56  ;;  %v531_v3 = vrot.slane %v468_v44, %v502_v56 }
 0x190   : > { %v514_v4 = vsel %vm504_vm0, %v513_v57, %v509_v61 }
 0x191   : > { %v474_v47 = vpop.permute.xlu0 %473  ;;  %v459_v48 = vpop.permute.xlu1 %458  ;;  %v570_v13 = vsel %vm569_vm1, %v514_v4, %v505_v9 }
 0x192   : > { %v518_v58 = vrot.slane %v459_v48, %v497_v55  ;;  %v540_v6 = vrot.slane %v474_v47, %v502_v56 }
 0x194   : > { %v523_v7 = vsel %vm504_vm0, %v522_v0, %v518_v58 }
 0x195   : > { %v465_v50 = vpop.permute.xlu1 %464  ;;  %v480_v53 = vpop.permute.xlu0 %479  ;;  %v572_v17 = vsel %vm571_vm2, %v523_v7, %v570_v13 }
 0x196   : > { %v527_v63 = vrot.slane %v465_v50, %v497_v55  ;;  %v549_v10 = vrot.slane %v480_v53, %v502_v56 }
 0x198   : > { %v532_v11 = vsel %vm504_vm0, %v531_v3, %v527_v63 }
 0x199   : > { %v471_v54 = vpop.permute.xlu1 %470  ;;  %v486_v59 = vpop.permute.xlu0 %485  ;;  %v574_v19 = vsel %vm573_vm3, %v532_v11, %v572_v17 }
 0x19a   : > { %v536_v1 = vrot.slane %v471_v54, %v497_v55  ;;  %v558_v14 = vrot.slane %v486_v59, %v502_v56 }
 0x19c   : > { %v541_v15 = vsel %vm504_vm0, %v540_v6, %v536_v1 }
 0x19d   : > { %v477_v60 = vpop.permute.xlu1 %476  ;;  %v492_v16 = vpop.permute.xlu0 %491  ;;  %v576_v22 = vsel %vm575_vm4, %v541_v15, %v574_v19 }
 0x19e   : > { %v545_v5 = vrot.slane %v477_v60, %v497_v55  ;;  %v567_v23 = vrot.slane %v492_v16, %v502_v56 }
 0x1a0   : > { %v550_v18 = vsel %vm504_vm0, %v549_v10, %v545_v5 }
 0x1a1   : > { %v483_v8 = vpop.permute.xlu1 %482  ;;  %v578_v25 = vsel %vm577_vm5, %v550_v18, %v576_v22 }
 0x1a2   : > { %v554_v12 = vrot.slane %v483_v8, %v497_v55 }
 0x1a4   : > { %v559_v20 = vsel %vm504_vm0, %v558_v14, %v554_v12 }
 0x1a5   : > { %v489_v21 = vpop.permute.xlu1 %488  ;;  %v580_v26 = vsel %vm579_vm6, %v559_v20, %v578_v25 }
 0x1a6   : > { %v563_v24 = vrot.slane %v489_v21, %v497_v55 }
 0x1a8   : > { %v568_v27 = vsel %vm504_vm0, %v567_v23, %v563_v24 }
 0x1a9   : > { %v582_v28 = vsel %vm581_vm7, %v568_v27, %v580_v26 }
 0x1aa   : > { %585 = vst.msk [vmem:[%s290_s12] sm:$0xff] %vm584_vm8, %v582_v28 }
 0x1ab   : > { %954 = shalt.err (!%p951_p2)
}
 0x1ac   : > { %s955_s11 = scalar_lea.hbm %s1257_s22, 128  ;;  %s959_s23 = scalar_lea.hbm %s1303_s4, 256 }
 0x1ad   : > { %p956_p9 = scmp.ne.s32.totalorder %s1257_s22, %s955_s11  ;;  %p960_p0 = scmp.lt.s32.totalorder %s1257_s22, %s1303_s4 }
 0x1ae   : > { %p961_p7 = scmp.lt.s32.totalorder %s959_s23, %s955_s11 }
 0x1af   : > { %p957_p12 = pnand %p956_p9, %p1160_p3 }
 0x1b0   : > { %p962_p5 = por %p961_p7, %p960_p0 }
 0x1b1   : > { %p958_p13 = pneg %p957_p12 }
 0x1b3   : > { %p963_p1 = pnand %p962_p5, %p958_p13 }
 0x1b5   : > { %966 = shalt.err (!%p963_p1)
}
 0x1b6   : > { %751 = dma.vmem_to_hbm [thread:$0]  (%p1160_p3), %s602_s14, 128, %s1257_s22, %s587_s18  }
 0x1b7 PF: > { %s613_s8 = sand.u32 1, %s1005_s15   ;;  %p1316_p4 = scmp.ne.s32.totalorder %s1309_s26, 0 }
 0x1b8   : > { %p1317_p6 = scmp.ge.s32.totalorder %s1025_s20, 2  ;;  %s614_s12 = scalar_lea.sflag [#allocation4], %s613_s8 }
 0x1ba   : > { %p765_p8 = pnand %p1317_p6, %p1316_p4 }
 0x1bc   : > { %p766_p10 = pneg %p765_p8 }
 0x1be   : > { %1000 = dma.done.wait (%p766_p10), %s614_s12, 128  }
 0x1bf   : > { %1002 = vsyncadd (%p766_p10), %s614_s12, 4294967168  ;;  %s21_s20 = sadd.s32 1, %s1025_s20   ;;  %s1318_s15 = smov %s1009_s16 }
 0x1c0   : > { %p18_p11 = scmp.ge.s32.totalorder %s21_s20, 4   ;;  %s1319_s16 = smov %s1013_s17 }
 0x1c1   : > { %s1320_s17 = smov %s1169_s7  ;;  %s1321_s18 = smov %s1021_s19 }
 0x1c2   : > { %s1322_s19 = smov %s1324_s21  ;;  %20 = sbr.rel (!%p18_p11) target bundleno = 7 (0x7), region = 94 }
 0x1c7   :  { %619 = vsyncpa [#allocation3], 1 }
 0x1c8   :  { %621 = vsyncpa [#allocation3 + $0x1], 1 }
 0x1c9   :  { %622 = vsyncpa [#allocation6], 1 }
 0x1ca   :  { %623 = vsyncpa [#allocation4], 1 }
 0x1cb   :  { %625 = vsyncpa [#allocation4 + $0x1], 1 }

</bundles_post_ra>
